<compile_context>
chip_gen: v7x
topology: tpu7x:2x2x1
jax: 0.10.0
libtpu: 0.0.40
codegen_flags: <defaults>
</compile_context>

<pallas_src>
import functools

import jax
import jax.numpy as jnp
import numpy as np
from jax.experimental import pallas as pl
from jax.experimental.pallas import tpu as pltpu


def _round_up(v, m):
    return ((v + m - 1) // m) * m


def _fused_mlp_kernel(x_ref, w1_ref, b1_ref, w2_ref, b2_ref, w3_ref, b3_ref, o_ref):
    """Fused 3-layer MLP for ALL articulators at once (column-packed weights).

    x:  (tile_N, L)       w1: (L, H2P)     b1: (1, H2P)
    h1: (tile_N, H2P)     w2: (H2P, HP)    b2: (1, HP)
    h2: (tile_N, HP)      w3: (HP, OUTP)   b3: (1, OUTP)
    o:  (tile_N, OUTP)    OUTP is a multiple of 128 -> unmasked lane-dense stores.

    Matmul inputs may be bf16 (v6e/v7x MXU path); accumulation, bias add and
    ReLU stay f32 (preferred_element_type) so the VPU work is f32 on v5e too.
    """
    wdt = w1_ref.dtype
    h1 = jnp.dot(x_ref[...], w1_ref[...], preferred_element_type=jnp.float32)
    h1 = jnp.maximum(h1 + b1_ref[...], 0.0)
    h2 = jnp.dot(h1.astype(wdt), w2_ref[...], preferred_element_type=jnp.float32)
    h2 = jnp.maximum(h2 + b2_ref[...], 0.0)
    out = jnp.dot(h2.astype(wdt), w3_ref[...], preferred_element_type=jnp.float32)
    o_ref[...] = (out + b3_ref[...]).astype(o_ref.dtype)


def _pack_weights(params, indices_dict, latent_size, in_features, hidden_features,
                  compute_dtype):
    """Scatter/block-diagonal-pack all articulators into 128-aligned matrices."""
    H2, H, F = hidden_features // 2, hidden_features, in_features
    arts = sorted(indices_dict.keys())
    A = len(arts)
    H2P = _round_up(A * H2, 128)
    HP = _round_up(A * H, 128)
    OUTP = _round_up(A * F, 128)

    W1 = jnp.zeros((latent_size, H2P), jnp.float32)
    B1 = jnp.zeros((1, H2P), jnp.float32)
    W2 = jnp.zeros((H2P, HP), jnp.float32)
    B2 = jnp.zeros((1, HP), jnp.float32)
    W3 = jnp.zeros((HP, OUTP), jnp.float32)
    B3 = jnp.zeros((1, OUTP), jnp.float32)
    for a, art in enumerate(arts):
        idx = np.asarray(indices_dict[art], np.int32)
        # Duplicate latent indices would be silently collapsed by the scatter,
        # diverging from the gather-based reference semantics.
        assert len(set(idx.tolist())) == len(idx), (
            f"duplicate latent indices for articulator {art!r}")
        p = params[art]
        W1 = W1.at[idx, a * H2:(a + 1) * H2].set(p["w1"].astype(jnp.float32))
        B1 = B1.at[0, a * H2:(a + 1) * H2].set(p["b1"].astype(jnp.float32))
        W2 = W2.at[a * H2:(a + 1) * H2, a * H:(a + 1) * H].set(p["w2"].astype(jnp.float32))
        B2 = B2.at[0, a * H:(a + 1) * H].set(p["b2"].astype(jnp.float32))
        W3 = W3.at[a * H:(a + 1) * H, a * F:(a + 1) * F].set(p["w3"].astype(jnp.float32))
        B3 = B3.at[0, a * F:(a + 1) * F].set(p["b3"].astype(jnp.float32))

    # Weights go to the matmul dtype; biases stay f32 (added to f32 accumulators).
    return (W1.astype(compute_dtype), B1, W2.astype(compute_dtype), B2,
            W3.astype(compute_dtype), B3, A, H2P, HP, OUTP)


def multi_decoder_pallas(x, params, indices_dict, in_features, hidden_features,
                         *, tile_n=4096, compute_dtype=jnp.float32, out_dtype=None):
    """Forward pass of MultiDecoder with AE `Decoder` sub-modules.

    x: (batch, length, latent_size) float32
    params: dict articulator -> dict(w1 (C_a,H2), b1 (H2,), w2 (H2,H), b2 (H,),
                                     w3 (H,F), b3 (F,))   (pre-transposed Linear)
    Returns (batch, length, num_articulators, in_features) in `out_dtype`
    (defaults to x.dtype).
    """
    bs, length, latent_size = x.shape
    N = bs * length
    F = in_features
    out_dtype = x.dtype if out_dtype is None else out_dtype

    (W1, B1, W2, B2, W3, B3, A, H2P, HP, OUTP) = _pack_weights(
        params, indices_dict, latent_size, in_features, hidden_features,
        compute_dtype)

    # ---- exact VMEM budget -> token tile size --------------------------------
    itm_w = jnp.dtype(compute_dtype).itemsize
    itm_o = jnp.dtype(out_dtype).itemsize
    weight_bytes = ((latent_size * H2P + H2P * HP + HP * OUTP) * itm_w
                    + (H2P + HP + OUTP) * 4)                 # biases are f32
    row_bytes = (3 * latent_size * itm_w                     # x tile (Buffered(3))
                 + 2 * OUTP * itm_o                          # out tile (double buf)
                 + (H2P + HP + OUTP) * 4)                    # f32 intermediates

    try:
        vmem_cap = int(pltpu.get_tpu_info().vmem_capacity_bytes)
    except Exception:  # pragma: no cover - conservative v7x-sized fallback
        vmem_cap = 64 * 1024 * 1024
    budget = min(int(0.6 * vmem_cap), 48 * 1024 * 1024)
    tile_cap = max(8, ((budget - 2 * weight_bytes) // row_bytes) // 8 * 8)

    n8 = _round_up(N, 8)                                     # sublane-aligned rows
    tile_N = max(8, min(_round_up(tile_n, 8), tile_cap, n8))
    n_tiles = -(-n8 // tile_N)
    if n8 > 8:
        # Even tile count so the "parallel" axis shards evenly over v7x's 2 TCs.
        if n_tiles == 1:
            n_tiles = 2
        elif n_tiles % 2:
            n_tiles += 1
        tile_N = min(tile_N, _round_up(-(-n8 // n_tiles), 8))
    N_padded = n_tiles * tile_N

    x_flat = x.reshape(N, latent_size).astype(compute_dtype)
    if N_padded != N:
        x_flat = jnp.pad(x_flat, ((0, N_padded - N), (0, 0)))

    # True requirement (+25% headroom); covers the no-pipeline-hint fallback
    # where weights are double-buffered.  Clamped to device VMEM capacity.
    need = 2 * weight_bytes + tile_N * row_bytes
    vmem_limit = int(min(max(int(1.25 * need), 8 * 1024 * 1024), vmem_cap))

    def _call(use_pipeline_hints):
        if use_pipeline_hints:
            x_buf = min(3, max(2, n_tiles))
            x_spec = pl.BlockSpec((tile_N, latent_size), lambda i: (i, 0),
                                  pipeline_mode=pl.Buffered(x_buf))
            def wspec(shape):  # constant index_map -> resident, single-buffered
                return pl.BlockSpec(shape, lambda i: (0, 0),
                                    pipeline_mode=pl.Buffered(1))
        else:
            x_spec = pl.BlockSpec((tile_N, latent_size), lambda i: (i, 0))
            def wspec(shape):
                return pl.BlockSpec(shape, lambda i: (0, 0))
        return pl.pallas_call(
            _fused_mlp_kernel,
            out_shape=jax.ShapeDtypeStruct((N_padded, OUTP), out_dtype),
            grid=(n_tiles,),
            in_specs=[
                x_spec,                              # x (streamed)
                wspec((latent_size, H2P)),           # W1 (resident)
                wspec((1, H2P)),                     # B1
                wspec((H2P, HP)),                    # W2
                wspec((1, HP)),                      # B2
                wspec((HP, OUTP)),                   # W3
                wspec((1, OUTP)),                    # B3
            ],
            out_specs=pl.BlockSpec((tile_N, OUTP), lambda i: (i, 0)),
            compiler_params=pltpu.CompilerParams(
                dimension_semantics=("parallel",),
                vmem_limit_bytes=vmem_limit,
            ),
        )(x_flat, W1, B1, W2, B2, W3, B3)

    try:
        out = _call(True)
    except Exception:
        # pipeline_mode hints unsupported on this jax/libtpu build -> plain specs.
        out = _call(False)

    AF = A * F
    if N_padded != N or OUTP != AF:
        # TODO(synk): expose the lane-padded (N_padded, OUTP) slab directly to
        # downstream consumers to avoid this extra copy of the output stream.
        out = out[:N, :AF]
    return out.reshape(bs, length, A, F)


def init_params(key, indices_dict, in_features, hidden_features):
    """Deterministic synthetic weights (PyTorch Linear stored pre-transposed)."""
    H2 = hidden_features // 2
    H = hidden_features
    F = in_features
    params = {}
    for art in sorted(indices_dict.keys()):
        c = len(indices_dict[art])
        key, *ks = jax.random.split(key, 7)
        params[art] = {
            "w1": jax.random.normal(ks[0], (c, H2), jnp.float32) * 0.1,
            "b1": jax.random.normal(ks[1], (H2,), jnp.float32) * 0.1,
            "w2": jax.random.normal(ks[2], (H2, H), jnp.float32) * 0.1,
            "b2": jax.random.normal(ks[3], (H,), jnp.float32) * 0.1,
            "w3": jax.random.normal(ks[4], (H, F), jnp.float32) * 0.1,
            "b3": jax.random.normal(ks[5], (F,), jnp.float32) * 0.1,
        }
    return params


def reference_forward(x, params, indices_dict):
    """Pure-JAX reference mirroring the PyTorch forward, for verification."""
    outs = []
    for art in sorted(indices_dict.keys()):
        idx = jnp.asarray(indices_dict[art], dtype=jnp.int32)
        p = params[art]
        z = jnp.take(x, idx, axis=-1)
        h1 = jnp.maximum(z @ p["w1"] + p["b1"], 0.0)
        h2 = jnp.maximum(h1 @ p["w2"] + p["b2"], 0.0)
        o = h2 @ p["w3"] + p["b3"]
        outs.append(o[..., None, :])
    return jnp.concatenate(outs, axis=-2)


if __name__ == "__main__":
    # Small, forward-consistent shapes.
    indices_dict = {
        "tongue": [0, 1, 2],
        "lower-lip": [2, 3],
        "velum": [1, 3, 4],
    }
    latent_size = max(i for v in indices_dict.values() for i in v) + 1  # 5
    in_features = 32       # decoder out_features
    hidden_features = 32   # -> hidden//2 = 16
    batch, length = 2, 8

    key = jax.random.PRNGKey(0)
    kx, kp = jax.random.split(key)
    x = jax.random.normal(kx, (batch, length, latent_size), jnp.float32)
    params = init_params(kp, indices_dict, in_features, hidden_features)

    ref = reference_forward(x, params, indices_dict)

    run = functools.partial(
        multi_decoder_pallas,
        indices_dict=indices_dict,
        in_features=in_features,
        hidden_features=hidden_features,
    )

    # f32 matmul path: tight reference check.
    out_f32 = jax.block_until_ready(run(x, params))
    assert out_f32.shape == (batch, length, len(indices_dict), in_features), out_f32.shape
    np.testing.assert_allclose(np.asarray(out_f32), np.asarray(ref),
                               rtol=1e-5, atol=1e-5)

    # bf16 matmul-input/weight path (v6e/v7x MXU, halved HBM streams), f32 accumulation.
    out_bf16 = jax.block_until_ready(
        run(x, params, compute_dtype=jnp.bfloat16, out_dtype=jnp.bfloat16))
    np.testing.assert_allclose(np.asarray(out_bf16.astype(jnp.float32)),
                               np.asarray(ref), rtol=5e-2, atol=5e-2)

    print("KERNEL_OK")
</pallas_src>

<mosaic_0001>
module attributes {stable_mosaic.version = 11 : i64} {
  func.func @_fused_mlp_kernel(%arg0: i32, %arg1: memref<8x5xf32, #tpu.memory_space<vmem>>, %arg2: memref<5x128xf32, #tpu.memory_space<vmem>>, %arg3: memref<1x128xf32, #tpu.memory_space<vmem>>, %arg4: memref<128x128xf32, #tpu.memory_space<vmem>>, %arg5: memref<1x128xf32, #tpu.memory_space<vmem>>, %arg6: memref<128x128xf32, #tpu.memory_space<vmem>>, %arg7: memref<1x128xf32, #tpu.memory_space<vmem>>, %arg8: memref<8x128xf32, #tpu.memory_space<vmem>>) attributes {dimension_semantics = [#tpu.dimension_semantics<parallel>], iteration_bounds = array<i64: 2>, scalar_prefetch = 0 : i64, scratch_operands = 0 : i64, tpu.core_type = #tpu.core_type<tc>, window_params = [{pipeline_mode = #tpu.pipeline_mode<double_buffered>, transform_indices = @transform_0, window_bounds = array<i64: 8, 5>}, {pipeline_mode = #tpu.pipeline_mode<synchronous>, transform_indices = @transform_1, window_bounds = array<i64: 5, 128>}, {pipeline_mode = #tpu.pipeline_mode<synchronous>, transform_indices = @transform_2, window_bounds = array<i64: 1, 128>}, {pipeline_mode = #tpu.pipeline_mode<synchronous>, transform_indices = @transform_3, window_bounds = array<i64: 128, 128>}, {pipeline_mode = #tpu.pipeline_mode<synchronous>, transform_indices = @transform_4, window_bounds = array<i64: 1, 128>}, {pipeline_mode = #tpu.pipeline_mode<synchronous>, transform_indices = @transform_5, window_bounds = array<i64: 128, 128>}, {pipeline_mode = #tpu.pipeline_mode<synchronous>, transform_indices = @transform_6, window_bounds = array<i64: 1, 128>}, {transform_indices = @transform_7, window_bounds = array<i64: 8, 128>}]} {
    %c0 = arith.constant 0 : index
    %c0_0 = arith.constant 0 : index
    %0 = vector.load %arg1[%c0, %c0_0] : memref<8x5xf32, #tpu.memory_space<vmem>>, vector<8x5xf32>
    %c0_1 = arith.constant 0 : index
    %c0_2 = arith.constant 0 : index
    %1 = vector.load %arg2[%c0_1, %c0_2] : memref<5x128xf32, #tpu.memory_space<vmem>>, vector<5x128xf32>
    %cst = arith.constant dense<0.000000e+00> : vector<8x128xf32>
    %2 = tpu.matmul %0, %1, %cst {dimension_numbers = #tpu.dot_dimension_numbers<[1], [0], [0], [1], [0, 0, 1, 1], [], []>} : vector<8x5xf32>, vector<5x128xf32>, vector<8x128xf32> -> vector<8x128xf32>
    %c0_3 = arith.constant 0 : index
    %c0_4 = arith.constant 0 : index
    %3 = vector.load %arg3[%c0_3, %c0_4] : memref<1x128xf32, #tpu.memory_space<vmem>>, vector<1x128xf32>
    %4 = vector.broadcast %3 : vector<1x128xf32> to vector<8x128xf32>
    %5 = arith.addf %2, %4 : vector<8x128xf32>
    %cst_5 = arith.constant 0.000000e+00 : f32
    %6 = vector.broadcast %cst_5 : f32 to vector<8x128xf32>
    %7 = arith.maximumf %5, %6 : vector<8x128xf32>
    %c0_6 = arith.constant 0 : index
    %c0_7 = arith.constant 0 : index
    %8 = vector.load %arg4[%c0_6, %c0_7] : memref<128x128xf32, #tpu.memory_space<vmem>>, vector<128x128xf32>
    %cst_8 = arith.constant dense<0.000000e+00> : vector<8x128xf32>
    %9 = tpu.matmul %7, %8, %cst_8 {dimension_numbers = #tpu.dot_dimension_numbers<[1], [0], [0], [1], [0, 0, 1, 1], [], []>} : vector<8x128xf32>, vector<128x128xf32>, vector<8x128xf32> -> vector<8x128xf32>
    %c0_9 = arith.constant 0 : index
    %c0_10 = arith.constant 0 : index
    %10 = vector.load %arg5[%c0_9, %c0_10] : memref<1x128xf32, #tpu.memory_space<vmem>>, vector<1x128xf32>
    %11 = vector.broadcast %10 : vector<1x128xf32> to vector<8x128xf32>
    %12 = arith.addf %9, %11 : vector<8x128xf32>
    %cst_11 = arith.constant 0.000000e+00 : f32
    %13 = vector.broadcast %cst_11 : f32 to vector<8x128xf32>
    %14 = arith.maximumf %12, %13 : vector<8x128xf32>
    %c0_12 = arith.constant 0 : index
    %c0_13 = arith.constant 0 : index
    %15 = vector.load %arg6[%c0_12, %c0_13] : memref<128x128xf32, #tpu.memory_space<vmem>>, vector<128x128xf32>
    %cst_14 = arith.constant dense<0.000000e+00> : vector<8x128xf32>
    %16 = tpu.matmul %14, %15, %cst_14 {dimension_numbers = #tpu.dot_dimension_numbers<[1], [0], [0], [1], [0, 0, 1, 1], [], []>} : vector<8x128xf32>, vector<128x128xf32>, vector<8x128xf32> -> vector<8x128xf32>
    %c0_15 = arith.constant 0 : index
    %c0_16 = arith.constant 0 : index
    %17 = vector.load %arg7[%c0_15, %c0_16] : memref<1x128xf32, #tpu.memory_space<vmem>>, vector<1x128xf32>
    %18 = vector.broadcast %17 : vector<1x128xf32> to vector<8x128xf32>
    %19 = arith.addf %16, %18 : vector<8x128xf32>
    %c0_17 = arith.constant 0 : index
    %c0_18 = arith.constant 0 : index
    %20 = vector.load %arg8[%c0_17, %c0_18] : memref<8x128xf32, #tpu.memory_space<vmem>>, vector<8x128xf32>
    tpu.vector_store %arg8[%c0_17, %c0_18], %19 {strides = array<i32>} : memref<8x128xf32, #tpu.memory_space<vmem>>, vector<8x128xf32>,
    return
  }
  func.func @transform_0(%arg0: i32) -> (i32, i32) {
    %c0_i32 = arith.constant 0 : i32
    %c0_i32_0 = arith.constant 0 : i32
    return %arg0, %c0_i32 : i32, i32
  }
  func.func @transform_1(%arg0: i32) -> (i32, i32) {
    %c0_i32 = arith.constant 0 : i32
    %c0_i32_0 = arith.constant 0 : i32
    %c0_i32_1 = arith.constant 0 : i32
    return %c0_i32, %c0_i32_0 : i32, i32
  }
  func.func @transform_2(%arg0: i32) -> (i32, i32) {
    %c0_i32 = arith.constant 0 : i32
    %c0_i32_0 = arith.constant 0 : i32
    %c0_i32_1 = arith.constant 0 : i32
    return %c0_i32, %c0_i32_0 : i32, i32
  }
  func.func @transform_3(%arg0: i32) -> (i32, i32) {
    %c0_i32 = arith.constant 0 : i32
    %c0_i32_0 = arith.constant 0 : i32
    %c0_i32_1 = arith.constant 0 : i32
    return %c0_i32, %c0_i32_0 : i32, i32
  }
  func.func @transform_4(%arg0: i32) -> (i32, i32) {
    %c0_i32 = arith.constant 0 : i32
    %c0_i32_0 = arith.constant 0 : i32
    %c0_i32_1 = arith.constant 0 : i32
    return %c0_i32, %c0_i32_0 : i32, i32
  }
  func.func @transform_5(%arg0: i32) -> (i32, i32) {
    %c0_i32 = arith.constant 0 : i32
    %c0_i32_0 = arith.constant 0 : i32
    %c0_i32_1 = arith.constant 0 : i32
    return %c0_i32, %c0_i32_0 : i32, i32
  }
  func.func @transform_6(%arg0: i32) -> (i32, i32) {
    %c0_i32 = arith.constant 0 : i32
    %c0_i32_0 = arith.constant 0 : i32
    %c0_i32_1 = arith.constant 0 : i32
    return %c0_i32, %c0_i32_0 : i32, i32
  }
  func.func @transform_7(%arg0: i32) -> (i32, i32) {
    %c0_i32 = arith.constant 0 : i32
    %c0_i32_0 = arith.constant 0 : i32
    return %arg0, %c0_i32 : i32, i32
  }
}

module attributes {stable_mosaic.version = 11 : i64} {
  func.func @_fused_mlp_kernel(%arg0: i32, %arg1: memref<8x5xf32, #tpu.memory_space<vmem>>, %arg2: memref<5x128xf32, #tpu.memory_space<vmem>>, %arg3: memref<1x128xf32, #tpu.memory_space<vmem>>, %arg4: memref<128x128xf32, #tpu.memory_space<vmem>>, %arg5: memref<1x128xf32, #tpu.memory_space<vmem>>, %arg6: memref<128x128xf32, #tpu.memory_space<vmem>>, %arg7: memref<1x128xf32, #tpu.memory_space<vmem>>, %arg8: memref<8x128xf32, #tpu.memory_space<vmem>>) attributes {dimension_semantics = [#tpu.dimension_semantics<parallel>], iteration_bounds = array<i64: 2>, scalar_prefetch = 0 : i64, scratch_operands = 0 : i64, tpu.core_type = #tpu.core_type<tc>, window_params = [{transform_indices = @transform_0, window_bounds = array<i64: 8, 5>}, {pipeline_mode = #tpu.pipeline_mode<synchronous>, transform_indices = @transform_1, window_bounds = array<i64: 5, 128>}, {pipeline_mode = #tpu.pipeline_mode<synchronous>, transform_indices = @transform_2, window_bounds = array<i64: 1, 128>}, {pipeline_mode = #tpu.pipeline_mode<synchronous>, transform_indices = @transform_3, window_bounds = array<i64: 128, 128>}, {pipeline_mode = #tpu.pipeline_mode<synchronous>, transform_indices = @transform_4, window_bounds = array<i64: 1, 128>}, {pipeline_mode = #tpu.pipeline_mode<synchronous>, transform_indices = @transform_5, window_bounds = array<i64: 128, 128>}, {pipeline_mode = #tpu.pipeline_mode<synchronous>, transform_indices = @transform_6, window_bounds = array<i64: 1, 128>}, {transform_indices = @transform_7, window_bounds = array<i64: 8, 128>}]} {
    %c0 = arith.constant 0 : index
    %c0_0 = arith.constant 0 : index
    %0 = vector.load %arg1[%c0, %c0_0] : memref<8x5xf32, #tpu.memory_space<vmem>>, vector<8x5xf32>
    %c0_1 = arith.constant 0 : index
    %c0_2 = arith.constant 0 : index
    %1 = vector.load %arg2[%c0_1, %c0_2] : memref<5x128xf32, #tpu.memory_space<vmem>>, vector<5x128xf32>
    %cst = arith.constant dense<0.000000e+00> : vector<8x128xf32>
    %2 = tpu.matmul %0, %1, %cst {dimension_numbers = #tpu.dot_dimension_numbers<[1], [0], [0], [1], [0, 0, 1, 1], [], []>} : vector<8x5xf32>, vector<5x128xf32>, vector<8x128xf32> -> vector<8x128xf32>
    %c0_3 = arith.constant 0 : index
    %c0_4 = arith.constant 0 : index
    %3 = vector.load %arg3[%c0_3, %c0_4] : memref<1x128xf32, #tpu.memory_space<vmem>>, vector<1x128xf32>
    %4 = vector.broadcast %3 : vector<1x128xf32> to vector<8x128xf32>
    %5 = arith.addf %2, %4 : vector<8x128xf32>
    %cst_5 = arith.constant 0.000000e+00 : f32
    %6 = vector.broadcast %cst_5 : f32 to vector<8x128xf32>
    %7 = arith.maximumf %5, %6 : vector<8x128xf32>
    %c0_6 = arith.constant 0 : index
    %c0_7 = arith.constant 0 : index
    %8 = vector.load %arg4[%c0_6, %c0_7] : memref<128x128xf32, #tpu.memory_space<vmem>>, vector<128x128xf32>
    %cst_8 = arith.constant dense<0.000000e+00> : vector<8x128xf32>
    %9 = tpu.matmul %7, %8, %cst_8 {dimension_numbers = #tpu.dot_dimension_numbers<[1], [0], [0], [1], [0, 0, 1, 1], [], []>} : vector<8x128xf32>, vector<128x128xf32>, vector<8x128xf32> -> vector<8x128xf32>
    %c0_9 = arith.constant 0 : index
    %c0_10 = arith.constant 0 : index
    %10 = vector.load %arg5[%c0_9, %c0_10] : memref<1x128xf32, #tpu.memory_space<vmem>>, vector<1x128xf32>
    %11 = vector.broadcast %10 : vector<1x128xf32> to vector<8x128xf32>
    %12 = arith.addf %9, %11 : vector<8x128xf32>
    %cst_11 = arith.constant 0.000000e+00 : f32
    %13 = vector.broadcast %cst_11 : f32 to vector<8x128xf32>
    %14 = arith.maximumf %12, %13 : vector<8x128xf32>
    %c0_12 = arith.constant 0 : index
    %c0_13 = arith.constant 0 : index
    %15 = vector.load %arg6[%c0_12, %c0_13] : memref<128x128xf32, #tpu.memory_space<vmem>>, vector<128x128xf32>
    %cst_14 = arith.constant dense<0.000000e+00> : vector<8x128xf32>
    %16 = tpu.matmul %14, %15, %cst_14 {dimension_numbers = #tpu.dot_dimension_numbers<[1], [0], [0], [1], [0, 0, 1, 1], [], []>} : vector<8x128xf32>, vector<128x128xf32>, vector<8x128xf32> -> vector<8x128xf32>
    %c0_15 = arith.constant 0 : index
    %c0_16 = arith.constant 0 : index
    %17 = vector.load %arg7[%c0_15, %c0_16] : memref<1x128xf32, #tpu.memory_space<vmem>>, vector<1x128xf32>
    %18 = vector.broadcast %17 : vector<1x128xf32> to vector<8x128xf32>
    %19 = arith.addf %16, %18 : vector<8x128xf32>
    %c0_17 = arith.constant 0 : index
    %c0_18 = arith.constant 0 : index
    %20 = vector.load %arg8[%c0_17, %c0_18] : memref<8x128xf32, #tpu.memory_space<vmem>>, vector<8x128xf32>
    tpu.vector_store %arg8[%c0_17, %c0_18], %19 {strides = array<i32>} : memref<8x128xf32, #tpu.memory_space<vmem>>, vector<8x128xf32>,
    return
  }
  func.func @transform_0(%arg0: i32) -> (i32, i32) {
    %c0_i32 = arith.constant 0 : i32
    %c0_i32_0 = arith.constant 0 : i32
    return %arg0, %c0_i32 : i32, i32
  }
  func.func @transform_1(%arg0: i32) -> (i32, i32) {
    %c0_i32 = arith.constant 0 : i32
    %c0_i32_0 = arith.constant 0 : i32
    %c0_i32_1 = arith.constant 0 : i32
    return %c0_i32, %c0_i32_0 : i32, i32
  }
  func.func @transform_2(%arg0: i32) -> (i32, i32) {
    %c0_i32 = arith.constant 0 : i32
    %c0_i32_0 = arith.constant 0 : i32
    %c0_i32_1 = arith.constant 0 : i32
    return %c0_i32, %c0_i32_0 : i32, i32
  }
  func.func @transform_3(%arg0: i32) -> (i32, i32) {
    %c0_i32 = arith.constant 0 : i32
    %c0_i32_0 = arith.constant 0 : i32
    %c0_i32_1 = arith.constant 0 : i32
    return %c0_i32, %c0_i32_0 : i32, i32
  }
  func.func @transform_4(%arg0: i32) -> (i32, i32) {
    %c0_i32 = arith.constant 0 : i32
    %c0_i32_0 = arith.constant 0 : i32
    %c0_i32_1 = arith.constant 0 : i32
    return %c0_i32, %c0_i32_0 : i32, i32
  }
  func.func @transform_5(%arg0: i32) -> (i32, i32) {
    %c0_i32 = arith.constant 0 : i32
    %c0_i32_0 = arith.constant 0 : i32
    %c0_i32_1 = arith.constant 0 : i32
    return %c0_i32, %c0_i32_0 : i32, i32
  }
  func.func @transform_6(%arg0: i32) -> (i32, i32) {
    %c0_i32 = arith.constant 0 : i32
    %c0_i32_0 = arith.constant 0 : i32
    %c0_i32_1 = arith.constant 0 : i32
    return %c0_i32, %c0_i32_0 : i32, i32
  }
  func.func @transform_7(%arg0: i32) -> (i32, i32) {
    %c0_i32 = arith.constant 0 : i32
    %c0_i32_0 = arith.constant 0 : i32
    return %arg0, %c0_i32 : i32, i32
  }
}

</mosaic_0001>

<bundles_post_ra>
// kernel: tpu_custom_call.1
= control target key start
LH: loop header
LB: loop body
LE: loop exit
PB: predicated region body
PF: predicated region fallthrough
CT: control target
= control target key end

     0   :  { %12 = vsyncpa [#allocation3], 0  ;;  %s1297_s0 = inlined_call_operand.vmem [shape: f32[16,5], index: 0, kind: input, shape index: {}]   ;;  %s1298_s1 = inlined_call_operand.vmem [shape: f32[5,128], index: 1, kind: input, shape index: {}]   ;;  %s1299_s2 = inlined_call_operand.vmem [shape: f32[1,128], index: 2, kind: input, shape index: {}]   ;;  %s1300_s3 = inlined_call_operand.hbm [shape: f32[128,128], index: 3, kind: input, shape index: {}]   ;;  %s1301_s4 = inlined_call_operand.vmem [shape: f32[1,128], index: 4, kind: input, shape index: {}]   ;;  %s1302_s5 = inlined_call_operand.hbm [shape: f32[128,128], index: 5, kind: input, shape index: {}]   ;;  %s1303_s6 = inlined_call_operand.vmem [shape: f32[1,128], index: 6, kind: input, shape index: {}]   ;;  %s1304_s7 = inlined_call_operand.hbm [shape: f32[16,128], index: 7, kind: output, shape index: {}]  }
   0x1   :  { %13 = vsyncpa [#allocation6], 0 }
   0x2   :  { %14 = vsyncpa [#allocation4], 0 }
   0x3   :  { %16 = vsyncpa [#allocation4 + $0x1], 0  ;;  %s1094_s24 = smov 0   ;;  %s1096_s25 = smov 0  }
   0x4   :  { %s1098_s26 = smov 0   ;;  %s1100_s27 = smov 0  }
   0x5 LB: > { %s1115_s28 = sadd.s32 4294967295, %s1044_s27   ;;  %s675_s29 = sadd.s32 4294967294, %s1044_s27   ;;  %s1044_s27 = sphi %s1100_s27, %s1324_s27   ;;  %s1040_s26 = sphi %s1098_s26, %s1323_s26   ;;  %s1036_s25 = sphi %s1096_s25, %s1322_s25   ;;  %s1032_s24 = sphi %s1094_s24, %s1321_s24  }
   0x6   : > { %s1119_s30 = sadd.s32 1, %s1044_s27   ;;  %s181_s8 = sadd.s32 1, %s1040_s26 }
   0x7   : > { %s178_s9 = ssub.s32 %s1044_s27, %s1119_s30  ;;  %p191_p0 = scmp.ne.s32.totalorder %s1040_s26, %s1036_s25 }
   0x8   : > { %p179_p1 = scmp.eq.s32.totalorder %s178_s9, 0  ;;  %p192_p2 = scmp.eq.s32.totalorder %s1115_s28, 1 }
   0x9   : > { %p197_p3 = scmp.ne.s32.totalorder %s1036_s25, %s1032_s24  ;;  %p198_p4 = scmp.eq.s32.totalorder %s675_s29, 1 }
   0xa   : > { %s1130_s10 = scalar_select %p179_p1, %s1040_s26, %s181_s8  }
   0xb   : > { %p1132_p5 = por %p192_p2, %p191_p0  ;;  %p1136_p6 = por %p198_p4, %p197_p3 }
   0xc   : > { %1308 = sst [smem:[#allocation11_spill]] %s1130_s10  ;;  %p676_p7 = scmp.ge.s32.totalorder %s1044_s27, 1 }
   0xd   : > { %s1309_s11 = scalar_select %p1132_p5, 1, 0 }
   0xe   : > { %s1310_s12 = scalar_select %p1136_p6, 1, 0 }
   0xf   : > { %p205_p8 = scmp.lt.s32.totalorder %s1044_s27, 3  ;;  %p1305_p9 = scmp.eq.s32.totalorder %s1115_s28, 0 }
  0x10   : > { %s1046_s14 = smov [#allocation2]   ;;  %s1047_s17 = smov [#allocation5]  }
  0x11   : > { %p1143_p10 = pnand %p676_p7, %p205_p8  ;;  %s223_s15 = sshll.u32 %s1046_s14, 4  ;;  %s224_s15 = int_to_ptr.vmem [resolvable:$true] %s223_s15 }
  0x12   : > { %s239_s18 = sshll.u32 %s1047_s17, 4  ;;  %s918_s21 = scalar_lea.hbm %s1300_s3, 2048  ;;  %s1155_s18 = int_to_ptr.vmem [resolvable:$true] %s239_s18 }
  0x13   : > { %s1311_s13 = scalar_select %p1143_p10, 1, 0 }
  0x14   : > { %p863_p11 = pneg %p1143_p10  ;;  %p919_p13 = scmp.ne.s32.totalorder %s1300_s3, %s918_s21 }
  0x15   : > { %p925_p3 = scmp.lt.u32.totalorder %s918_s21, %s1300_s3 }
  0x16   : > { %p1151_p12 = pnand %p1305_p9, %p863_p11 }
  0x18   : > { %p920_p0 = pneg %p1151_p12 }
  0x1a   : > { %p921_p1 = pnand %p920_p0, %p919_p13 }
  0x1c   : > { %p922_p2 = pneg %p921_p1 }
  0x1e   : > { %p927_p4 = pnand %p925_p3, %p922_p2 }
  0x20   : > { %930 = shalt.err (!%p927_p4)
}
  0x21   : > { %s931_s9 = scalar_lea.vmem %s224_s15, 2048  ;;  %p939_p9 = scmp.lt.s32.totalorder %s224_s15, %s224_s15 }
  0x22   : > { %p932_p7 = scmp.ne.s32.totalorder %s224_s15, %s931_s9  ;;  %p940_p6 = scmp.lt.s32.totalorder %s931_s9, %s931_s9 }
  0x24   : > { %p934_p8 = pnand %p932_p7, %p920_p0  ;;  %p941_p5 = por %p940_p6, %p939_p9 }
  0x26   : > { %p935_p11 = pneg %p934_p8 }
  0x28   : > { %p942_p10 = pnand %p941_p5, %p935_p11 }
  0x2a   : > { %945 = shalt.err (!%p942_p10)
}
  0x2b   : > { %s1048_s14 = smov 128   ;;  %s1049_s17 = smov 8  }
  0x2c   : > { %866 = dma.hbm_to_vmem [thread:$0]  (!%p1151_p12), %s1300_s3, 2048, %s224_s15, [#allocation3], %s1048_s14, %s1048_s14, %s1049_s17  }
  0x2d   : > { %s946_s23 = scalar_lea.hbm %s1302_s5, 2048 }
  0x2e   : > { %p947_p13 = scmp.ne.s32.totalorder %s1302_s5, %s946_s23  ;;  %p953_p9 = scmp.lt.u32.totalorder %s946_s23, %s1302_s5 }
  0x30   : > { %p949_p5 = pnand %p947_p13, %p920_p0 }
  0x32   : > { %p950_p6 = pneg %p949_p5 }
  0x34   : > { %p955_p10 = pnand %p953_p9, %p950_p6 }
  0x36   : > { %958 = shalt.err (!%p955_p10)
}
  0x37   : > { %s959_s15 = scalar_lea.vmem %s1155_s18, 2048  ;;  %p967_p4 = scmp.lt.s32.totalorder %s1155_s18, %s1155_s18 }
  0x38   : > { %p960_p1 = scmp.ne.s32.totalorder %s1155_s18, %s959_s15  ;;  %p968_p7 = scmp.lt.s32.totalorder %s959_s15, %s959_s15 }
  0x3a   : > { %p962_p2 = pnand %p960_p1, %p920_p0  ;;  %p969_p8 = por %p968_p7, %p967_p4 }
  0x3c   : > { %p963_p3 = pneg %p962_p2 }
  0x3e   : > { %p970_p11 = pnand %p969_p8, %p963_p3 }
  0x40   : > { %973 = shalt.err (!%p970_p11)
}
  0x41   : > { %869 = dma.hbm_to_vmem [thread:$0]  (!%p1151_p12), %s1302_s5, 2048, %s1155_s18, [#allocation6], %s1048_s14, %s1048_s14, %s1049_s17  }
  0x42   : > { %p1313_p13 = scmp.ne.s32.totalorder %s1311_s13, 0 }
  0x43   : > { %p1314_p5 = scmp.eq.s32.totalorder (!%p1313_p13), %s1115_s28, 0 }
  0x44   : > { %265 = sbr.rel (%p1313_p13) target bundleno = 747 (0x2eb), region = 48 }
  0x4b   : > { %1019 = dma.done.wait (%p1314_p5), [#allocation3], 2048   ;;  %p1315_p0 = pmov %p1314_p5 }
  0x4d   : > { %1021 = vsyncadd (%p1315_p0), [#allocation3], 4294965248  ;;  %p1316_p6 = pmov %p1315_p0 }
  0x4e   : > { %p1317_p9 = pmov %p1315_p0 }
  0x4f   : > { %1023 = dma.done.wait (%p1316_p6), [#allocation6], 2048  }
  0x50   : > { %1025 = vsyncadd (%p1317_p9), [#allocation6], 4294965248  ;;  %p300_p10 = scmp.lt.s32.totalorder %s1115_s28, 1  ;;  %v1050_v0 = vmov 0.0   ;;  %vm1051_vm0 = vmmov 0   ;;  %v1052_v1 = vmov 0.0|0.0  }
  0x51   : > { %730 = vmatprep.subr.mxu0 %v1050_v0  ;;  %732 = vmatprep.mubr.msk.f32.mxu0 %vm1051_vm0, %v1050_v0  ;;  %vm317_vm1 = vcmask 1044480   ;;  %vm313_vm2 = vcmask 39936   ;;  %v305_v2 = vld [vmem:[%s1298_s1] sm:$0x1f]  ;;  %v393_v5 = vld [vmem:[#allocation2 + $0x8] sm:$0xff]  ;;  %v394_v6 = vld [vmem:[#allocation2 + $0x10] sm:$0xff] }
  0x52   : > { %s301_s13 = scalar_select %p300_p10, %s1115_s28, 1  ;;  %805 = vmatprep.subr.bf16.mxu1 %v1052_v1  ;;  %767 = vmatprep.mubr.msk.f32.mxu1 %vm1051_vm0, %v1050_v0  ;;  %v392_v4 = vld [vmem:[#allocation2] sm:$0xff]  ;;  %v395_v7 = vld [vmem:[#allocation2 + $0x18] sm:$0xff]  ;;  %v397_v11 = vld [vmem:[#allocation2 + $0x28] sm:$0xff] }
  0x53   : > { %731 = vmatpush3.msk.msra.mxu0 %vm317_vm1, %v305_v2  ;;  %v806_v8 = vpack.c.bf16 %v393_v5, %v392_v4  ;;  %v809_v9 = vpack.c.bf16 %v395_v7, %v394_v6  ;;  %v396_v10 = vld [vmem:[#allocation2 + $0x20] sm:$0xff]  ;;  %v398_v13 = vld [vmem:[#allocation2 + $0x30] sm:$0xff]  ;;  %v399_v14 = vld [vmem:[#allocation2 + $0x38] sm:$0xff]  ;;  %s297_s9 = sand.u32 1, %s1036_s25   ;;  %p1318_p1 = scmp.ne.s32.totalorder %s1309_s11, 0 }
  0x54   : > { %s684_s16 = sshll.u32 %s301_s13, 3  ;;  %829 = vmatprep.subr.bf16.mxu0 %v1052_v1  ;;  %v812_v12 = vpack.c.bf16 %v397_v11, %v396_v10  ;;  %v815_v15 = vpack.c.bf16 %v399_v14, %v398_v13  ;;  %v400_v16 = vld [vmem:[#allocation2 + $0x40] sm:$0xff]  ;;  %v401_v17 = vld [vmem:[#allocation2 + $0x48] sm:$0xff]  ;;  %v402_v19 = vld [vmem:[#allocation2 + $0x50] sm:$0xff]  ;;  %s683_s15 = sshll.u32 %s297_s9, 3 }
  0x55   : > { %s303_s17 = scalar_lea.vmem %s1297_s0, %s684_s16  ;;  %807 = vmatpush3.bf16.msra.mxu1 %v806_v8  ;;  %v818_v18 = vpack.c.bf16 %v401_v17, %v400_v16  ;;  %v403_v20 = vld [vmem:[#allocation2 + $0x58] sm:$0xff]  ;;  %v404_v22 = vld [vmem:[#allocation2 + $0x60] sm:$0xff]  ;;  %v405_v23 = vld [vmem:[#allocation2 + $0x68] sm:$0xff]  ;;  %s691_s13 = sshll.u32 %s1115_s28, 7 }
  0x56   : > { %v304_v3 = vld [vmem:[%s303_s17] sm:$0xff]  ;;  %808 = vmatprep.subr.bf16.mxu1 %v1052_v1  ;;  %v821_v21 = vpack.c.bf16 %v403_v20, %v402_v19  ;;  %v824_v24 = vpack.c.bf16 %v405_v23, %v404_v22  ;;  %v406_v25 = vld [vmem:[#allocation2 + $0x70] sm:$0xff]  ;;  %v407_v26 = vld [vmem:[#allocation2 + $0x78] sm:$0xff]  ;;  %s299_s16 = scalar_lea.vmem [#allocation7], %s683_s15  ;;  %s1255_s20 = scalar_lea.hbm %s1304_s7, %s691_s13 }
  0x57   : > { %733 = vmatmul.mubr.msk.f32.vlgmr.msra.gmra.mrb[0].mxu0 %vm313_vm2, %v304_v3  ;;  %v827_v27 = vpack.c.bf16 %v407_v26, %v406_v25  ;;  %v486_v28 = vld [vmem:[#allocation5] sm:$0xff]  ;;  %v487_v29 = vld [vmem:[#allocation5 + $0x8] sm:$0xff]  ;;  %v488_v30 = vld [vmem:[#allocation5 + $0x10] sm:$0xff]  ;;  %s594_s18 = sshll.u32 %s299_s16, 4  ;;  %s581_s21 = scalar_lea.sflag [#allocation4], %s297_s9  ;;  %s1257_s18 = int_to_ptr.vmem [resolvable:$true] %s594_s18 }
  0x58   : > { %802 = vmatprep.mubr.msk.f32.mxu0 %vm1051_vm0, %v1050_v0  ;;  %v830_v31 = vpack.c.bf16 %v487_v29, %v486_v28  ;;  %v489_v32 = vld [vmem:[#allocation5 + $0x18] sm:$0xff]  ;;  %v490_v34 = vld [vmem:[#allocation5 + $0x20] sm:$0xff]  ;;  %v491_v35 = vld [vmem:[#allocation5 + $0x28] sm:$0xff]  ;;  %s974_s22 = scalar_lea.vmem %s1257_s18, 128  ;;  %s1053_s28 = smov [#allocation7]  }
  0x59   : > { %810 = vmatpush3.bf16.msra.mxu1 %v809_v9  ;;  %v833_v33 = vpack.c.bf16 %v489_v32, %v488_v30  ;;  %v836_v36 = vpack.c.bf16 %v491_v35, %v490_v34  ;;  %v492_v37 = vld [vmem:[#allocation5 + $0x30] sm:$0xff]  ;;  %v493_v38 = vld [vmem:[#allocation5 + $0x38] sm:$0xff]  ;;  %v494_v40 = vld [vmem:[#allocation5 + $0x40] sm:$0xff]  ;;  %p975_p12 = scmp.ne.s32.totalorder %s1257_s18, %s974_s22  ;;  %s978_s23 = sshll.u32 %s1053_s28, 4  ;;  %s979_s23 = int_to_ptr.vmem [resolvable:$false] %s978_s23 }
  0x5a   : > { %811 = vmatprep.subr.bf16.mxu1 %v1052_v1  ;;  %831 = vmatpush3.bf16.msra.mxu0 %v830_v31  ;;  %v839_v39 = vpack.c.bf16 %v493_v38, %v492_v37  ;;  %v495_v41 = vld [vmem:[#allocation5 + $0x48] sm:$0xff]  ;;  %v496_v43 = vld [vmem:[#allocation5 + $0x50] sm:$0xff]  ;;  %v497_v44 = vld [vmem:[#allocation5 + $0x58] sm:$0xff]  ;;  %s980_s29 = scalar_lea.vmem %s979_s23, 256  ;;  %p981_p4 = scmp.lt.s32.totalorder %s1257_s18, %s979_s23 }
  0x5b   : > { %832 = vmatprep.subr.bf16.mxu0 %v1052_v1  ;;  %v842_v42 = vpack.c.bf16 %v495_v41, %v494_v40  ;;  %v845_v45 = vpack.c.bf16 %v497_v44, %v496_v43  ;;  %v498_v46 = vld [vmem:[#allocation5 + $0x60] sm:$0xff]  ;;  %v499_v47 = vld [vmem:[#allocation5 + $0x68] sm:$0xff]  ;;  %v500_v54 = vld [vmem:[#allocation5 + $0x70] sm:$0xff]  ;;  %p976_p2 = pnand %p975_p12, %p1318_p1  ;;  %p982_p7 = scmp.lt.s32.totalorder %s980_s29, %s974_s22 }
  0x5c   : > { %v848_v48 = vpack.c.bf16 %v499_v47, %v498_v46  ;;  %v685_v49 = vld [vmem:[%s1299_s2] ss:$0 sm:$0xff]  ;;  %v501_v55 = vld [vmem:[#allocation5 + $0x78] sm:$0xff] }
  0x5d   : > { %813 = vmatpush3.bf16.msra.mxu1 %v812_v12  ;;  %v851_v56 = vpack.c.bf16 %v501_v55, %v500_v54  ;;  %v688_v57 = vld [vmem:[%s1301_s4] ss:$0 sm:$0xff]  ;;  %p977_p3 = pneg %p976_p2  ;;  %p983_p8 = por %p982_p7, %p981_p4 }
  0x5e   : > { %814 = vmatprep.subr.bf16.mxu1 %v1052_v1  ;;  %834 = vmatpush3.bf16.msra.mxu0 %v833_v33  ;;  %v689_v62 = vld [vmem:[%s1303_s6] ss:$0 sm:$0xff] }
  0x5f   : > { %835 = vmatprep.subr.bf16.mxu0 %v1052_v1  ;;  %p984_p11 = pnand %p983_p8, %p977_p3 }
  0x61   : > { %816 = vmatpush3.bf16.msra.mxu1 %v815_v15 }
  0x62   : > { %817 = vmatprep.subr.bf16.mxu1 %v1052_v1  ;;  %837 = vmatpush3.bf16.msra.mxu0 %v836_v36 }
  0x63   : > { %838 = vmatprep.subr.bf16.mxu0 %v1052_v1 }
  0x65   : > { %819 = vmatpush3.bf16.msra.mxu1 %v818_v18 }
  0x66   : > { %820 = vmatprep.subr.bf16.mxu1 %v1052_v1  ;;  %840 = vmatpush3.bf16.msra.mxu0 %v839_v39 }
  0x67   : > { %841 = vmatprep.subr.bf16.mxu0 %v1052_v1 }
  0x69   : > { %822 = vmatpush3.bf16.msra.mxu1 %v821_v21 }
  0x6a   : > { %823 = vmatprep.subr.bf16.mxu1 %v1052_v1  ;;  %843 = vmatpush3.bf16.msra.mxu0 %v842_v42 }
  0x6b   : > { %844 = vmatprep.subr.bf16.mxu0 %v1052_v1 }
  0x6d   : > { %825 = vmatpush3.bf16.msra.mxu1 %v824_v24 }
  0x6e   : > { %826 = vmatprep.subr.bf16.mxu1 %v1052_v1  ;;  %846 = vmatpush3.bf16.msra.mxu0 %v845_v45 }
  0x6f   : > { %847 = vmatprep.subr.bf16.mxu0 %v1052_v1 }
  0x71   : > { %828 = vmatpush3.bf16.msra.mxu1 %v827_v27 }
  0x72   : > { %849 = vmatpush3.bf16.msra.mxu0 %v848_v48 }
  0x73   : > { %850 = vmatprep.subr.bf16.mxu0 %v1052_v1 }
  0x76   : > { %852 = vmatpush3.bf16.msra.mxu0 %v851_v56 }
 0x12a   : > { %v387_v50 = vpop.f32.mrb[0].mxu0 }
 0x12b   : > { %v388_v51 = vadd.f32 %v685_v49, %v387_v50  ;;  %v734_v52 = vpop.f32.mrb[1].mxu0 }
 0x12d   : > { %v391_v53 = vmax.f32 %v388_v51, 0.0 }
 0x12f   : > { %768 = vmatmul.mubr.f32.vlgmr.msra.gmra.mrb[0].mxu1 %v391_v53 }
 0x202   : > { %v481_v58 = vpop.f32.mrb[0].mxu1 }
 0x203   : > { %v482_v59 = vadd.f32 %v688_v57, %v481_v58  ;;  %v769_v60 = vpop.f32.mrb[1].mxu1 }
 0x205   : > { %v485_v61 = vmax.f32 %v482_v59, 0.0 }
 0x207   : > { %803 = vmatmul.mubr.f32.vlgmr.msra.gmra.mrb[2].mxu0 %v485_v61 }
 0x2da   : > { %v575_v63 = vpop.f32.mrb[2].mxu0 }
 0x2db   : > { %v576_v0 = vadd.f32 %v689_v62, %v575_v63  ;;  %v804_v1 = vpop.f32.mrb[3].mxu0 }
 0x2dd   : > { %579 = vst [vmem:[%s299_s16] sm:$0xff] %v576_v0 }
 0x2de   : > { %987 = shalt.err (!%p984_p11)
}
 0x2df   : > { %s988_s8 = scalar_lea.hbm %s1255_s20, 128  ;;  %s992_s10 = scalar_lea.hbm %s1304_s7, 256 }
 0x2e0   : > { %p989_p13 = scmp.ne.s32.totalorder %s1255_s20, %s988_s8  ;;  %p993_p6 = scmp.lt.u32.totalorder %s1255_s20, %s1304_s7 }
 0x2e1   : > { %p994_p9 = scmp.lt.u32.totalorder %s992_s10, %s988_s8  ;;  %p996_p12 = scmp.lt.u32.totalorder %s988_s8, %s1255_s20 }
 0x2e2   : > { %p990_p5 = pnand %p989_p13, %p1318_p1 }
 0x2e3   : > { %p995_p10 = por %p994_p9, %p993_p6 }
 0x2e4   : > { %p991_p0 = pneg %p990_p5 }
 0x2e5   : > { %p997_p2 = por %p996_p12, %p995_p10 }
 0x2e7   : > { %p998_p3 = pnand %p997_p2, %p991_p0 }
 0x2e9   : > { %1001 = shalt.err (!%p998_p3)
}
 0x2ea   : > { %861 = dma.vmem_to_hbm [thread:$0]  (%p1318_p1), %s1257_s18, 128, %s1255_s20, %s581_s21  }
 0x2eb PF: > { %p878_p4 = scmp.ge.s32.totalorder %s1044_s27, 2  ;;  %s606_s16 = sand.u32 1, %s1032_s24  }
 0x2ec   : > { %p1319_p7 = scmp.ne.s32.totalorder %s1310_s12, 0  ;;  %s607_s14 = scalar_lea.sflag [#allocation4], %s606_s16 }
 0x2ee   : > { %p871_p8 = pnand %p878_p4, %p1319_p7 }
 0x2f0   : > { %1027 = dma.done.wait (!%p871_p8), %s607_s14, 128  }
 0x2f1   : > { %1029 = vsyncadd (!%p871_p8), %s607_s14, 4294967168  ;;  %s1320_s17 = sld [smem:[#allocation11_spill]]  ;;  %p19_p11 = scmp.ge.s32.totalorder %s1119_s30, 4  }
 0x2f2   : > { %s1321_s24 = smov %s1036_s25  ;;  %s1322_s25 = smov %s1040_s26 }
 0x2f3   : > { %s1324_s27 = smov %s1119_s30  ;;  %21 = sbr.rel (!%p19_p11) target bundleno = 5 (0x5), region = 92 }
 0x2f7   : > { %s1323_s26 = smov %s1320_s17 }
 0x2fa   :  { %612 = vsyncpa [#allocation3], 1 }
 0x2fb   :  { %614 = vsyncpa [#allocation3 + $0x1], 1 }
 0x2fc   :  { %615 = vsyncpa [#allocation6], 1 }
 0x2fd   :  { %616 = vsyncpa [#allocation4], 1 }
 0x2fe   :  { %618 = vsyncpa [#allocation4 + $0x1], 1 }

// kernel: tpu_custom_call.1
= control target key start
LH: loop header
LB: loop body
LE: loop exit
PB: predicated region body
PF: predicated region fallthrough
CT: control target
= control target key end

     0   :  { %12 = vsyncpa [#allocation3], 0  ;;  %s1297_s0 = inlined_call_operand.vmem [shape: f32[16,5], index: 0, kind: input, shape index: {}]   ;;  %s1298_s1 = inlined_call_operand.vmem [shape: f32[5,128], index: 1, kind: input, shape index: {}]   ;;  %s1299_s2 = inlined_call_operand.vmem [shape: f32[1,128], index: 2, kind: input, shape index: {}]   ;;  %s1300_s3 = inlined_call_operand.hbm [shape: f32[128,128], index: 3, kind: input, shape index: {}]   ;;  %s1301_s4 = inlined_call_operand.vmem [shape: f32[1,128], index: 4, kind: input, shape index: {}]   ;;  %s1302_s5 = inlined_call_operand.hbm [shape: f32[128,128], index: 5, kind: input, shape index: {}]   ;;  %s1303_s6 = inlined_call_operand.vmem [shape: f32[1,128], index: 6, kind: input, shape index: {}]   ;;  %s1304_s7 = inlined_call_operand.hbm [shape: f32[16,128], index: 7, kind: output, shape index: {}]  }
   0x1   :  { %13 = vsyncpa [#allocation6], 0 }
   0x2   :  { %14 = vsyncpa [#allocation4], 0 }
   0x3   :  { %16 = vsyncpa [#allocation4 + $0x1], 0  ;;  %s1094_s24 = smov 0   ;;  %s1096_s25 = smov 0  }
   0x4   :  { %s1098_s26 = smov 0   ;;  %s1100_s27 = smov 0  }
   0x5 LB: > { %s1115_s28 = sadd.s32 4294967295, %s1044_s27   ;;  %s675_s29 = sadd.s32 4294967294, %s1044_s27   ;;  %s1044_s27 = sphi %s1100_s27, %s1324_s27   ;;  %s1040_s26 = sphi %s1098_s26, %s1323_s26   ;;  %s1036_s25 = sphi %s1096_s25, %s1322_s25   ;;  %s1032_s24 = sphi %s1094_s24, %s1321_s24  }
   0x6   : > { %s1119_s30 = sadd.s32 1, %s1044_s27   ;;  %s181_s8 = sadd.s32 1, %s1040_s26 }
   0x7   : > { %s178_s9 = ssub.s32 %s1044_s27, %s1119_s30  ;;  %p191_p0 = scmp.ne.s32.totalorder %s1040_s26, %s1036_s25 }
   0x8   : > { %p179_p1 = scmp.eq.s32.totalorder %s178_s9, 0  ;;  %p192_p2 = scmp.eq.s32.totalorder %s1115_s28, 1 }
   0x9   : > { %p197_p3 = scmp.ne.s32.totalorder %s1036_s25, %s1032_s24  ;;  %p198_p4 = scmp.eq.s32.totalorder %s675_s29, 1 }
   0xa   : > { %s1130_s10 = scalar_select %p179_p1, %s1040_s26, %s181_s8  }
   0xb   : > { %p1132_p5 = por %p192_p2, %p191_p0  ;;  %p1136_p6 = por %p198_p4, %p197_p3 }
   0xc   : > { %1308 = sst [smem:[#allocation11_spill]] %s1130_s10  ;;  %p676_p7 = scmp.ge.s32.totalorder %s1044_s27, 1 }
   0xd   : > { %s1309_s11 = scalar_select %p1132_p5, 1, 0 }
   0xe   : > { %s1310_s12 = scalar_select %p1136_p6, 1, 0 }
   0xf   : > { %p205_p8 = scmp.lt.s32.totalorder %s1044_s27, 3  ;;  %p1305_p9 = scmp.eq.s32.totalorder %s1115_s28, 0 }
  0x10   : > { %s1046_s14 = smov [#allocation2]   ;;  %s1047_s17 = smov [#allocation5]  }
  0x11   : > { %p1143_p10 = pnand %p676_p7, %p205_p8  ;;  %s223_s15 = sshll.u32 %s1046_s14, 4  ;;  %s224_s15 = int_to_ptr.vmem [resolvable:$true] %s223_s15 }
  0x12   : > { %s239_s18 = sshll.u32 %s1047_s17, 4  ;;  %s918_s21 = scalar_lea.hbm %s1300_s3, 2048  ;;  %s1155_s18 = int_to_ptr.vmem [resolvable:$true] %s239_s18 }
  0x13   : > { %s1311_s13 = scalar_select %p1143_p10, 1, 0 }
  0x14   : > { %p863_p11 = pneg %p1143_p10  ;;  %p919_p13 = scmp.ne.s32.totalorder %s1300_s3, %s918_s21 }
  0x15   : > { %p925_p3 = scmp.lt.u32.totalorder %s918_s21, %s1300_s3 }
  0x16   : > { %p1151_p12 = pnand %p1305_p9, %p863_p11 }
  0x18   : > { %p920_p0 = pneg %p1151_p12 }
  0x1a   : > { %p921_p1 = pnand %p920_p0, %p919_p13 }
  0x1c   : > { %p922_p2 = pneg %p921_p1 }
  0x1e   : > { %p927_p4 = pnand %p925_p3, %p922_p2 }
  0x20   : > { %930 = shalt.err (!%p927_p4)
}
  0x21   : > { %s931_s9 = scalar_lea.vmem %s224_s15, 2048  ;;  %p939_p9 = scmp.lt.s32.totalorder %s224_s15, %s224_s15 }
  0x22   : > { %p932_p7 = scmp.ne.s32.totalorder %s224_s15, %s931_s9  ;;  %p940_p6 = scmp.lt.s32.totalorder %s931_s9, %s931_s9 }
  0x24   : > { %p934_p8 = pnand %p932_p7, %p920_p0  ;;  %p941_p5 = por %p940_p6, %p939_p9 }
  0x26   : > { %p935_p11 = pneg %p934_p8 }
  0x28   : > { %p942_p10 = pnand %p941_p5, %p935_p11 }
  0x2a   : > { %945 = shalt.err (!%p942_p10)
}
  0x2b   : > { %s1048_s14 = smov 128   ;;  %s1049_s17 = smov 8  }
  0x2c   : > { %866 = dma.hbm_to_vmem [thread:$0]  (!%p1151_p12), %s1300_s3, 2048, %s224_s15, [#allocation3], %s1048_s14, %s1048_s14, %s1049_s17  }
  0x2d   : > { %s946_s23 = scalar_lea.hbm %s1302_s5, 2048 }
  0x2e   : > { %p947_p13 = scmp.ne.s32.totalorder %s1302_s5, %s946_s23  ;;  %p953_p9 = scmp.lt.u32.totalorder %s946_s23, %s1302_s5 }
  0x30   : > { %p949_p5 = pnand %p947_p13, %p920_p0 }
  0x32   : > { %p950_p6 = pneg %p949_p5 }
  0x34   : > { %p955_p10 = pnand %p953_p9, %p950_p6 }
  0x36   : > { %958 = shalt.err (!%p955_p10)
}
  0x37   : > { %s959_s15 = scalar_lea.vmem %s1155_s18, 2048  ;;  %p967_p4 = scmp.lt.s32.totalorder %s1155_s18, %s1155_s18 }
  0x38   : > { %p960_p1 = scmp.ne.s32.totalorder %s1155_s18, %s959_s15  ;;  %p968_p7 = scmp.lt.s32.totalorder %s959_s15, %s959_s15 }
  0x3a   : > { %p962_p2 = pnand %p960_p1, %p920_p0  ;;  %p969_p8 = por %p968_p7, %p967_p4 }
  0x3c   : > { %p963_p3 = pneg %p962_p2 }
  0x3e   : > { %p970_p11 = pnand %p969_p8, %p963_p3 }
  0x40   : > { %973 = shalt.err (!%p970_p11)
}
  0x41   : > { %869 = dma.hbm_to_vmem [thread:$0]  (!%p1151_p12), %s1302_s5, 2048, %s1155_s18, [#allocation6], %s1048_s14, %s1048_s14, %s1049_s17  }
  0x42   : > { %p1313_p13 = scmp.ne.s32.totalorder %s1311_s13, 0 }
  0x43   : > { %p1314_p5 = scmp.eq.s32.totalorder (!%p1313_p13), %s1115_s28, 0 }
  0x44   : > { %265 = sbr.rel (%p1313_p13) target bundleno = 747 (0x2eb), region = 48 }
  0x4b   : > { %1019 = dma.done.wait (%p1314_p5), [#allocation3], 2048   ;;  %p1315_p0 = pmov %p1314_p5 }
  0x4d   : > { %1021 = vsyncadd (%p1315_p0), [#allocation3], 4294965248  ;;  %p1316_p6 = pmov %p1315_p0 }
  0x4e   : > { %p1317_p9 = pmov %p1315_p0 }
  0x4f   : > { %1023 = dma.done.wait (%p1316_p6), [#allocation6], 2048  }
  0x50   : > { %1025 = vsyncadd (%p1317_p9), [#allocation6], 4294965248  ;;  %p300_p10 = scmp.lt.s32.totalorder %s1115_s28, 1  ;;  %v1050_v0 = vmov 0.0   ;;  %vm1051_vm0 = vmmov 0   ;;  %v1052_v1 = vmov 0.0|0.0  }
  0x51   : > { %730 = vmatprep.subr.mxu0 %v1050_v0  ;;  %732 = vmatprep.mubr.msk.f32.mxu0 %vm1051_vm0, %v1050_v0  ;;  %vm317_vm1 = vcmask 1044480   ;;  %vm313_vm2 = vcmask 39936   ;;  %v305_v2 = vld [vmem:[%s1298_s1] sm:$0x1f]  ;;  %v393_v5 = vld [vmem:[#allocation2 + $0x8] sm:$0xff]  ;;  %v394_v6 = vld [vmem:[#allocation2 + $0x10] sm:$0xff] }
  0x52   : > { %s301_s13 = scalar_select %p300_p10, %s1115_s28, 1  ;;  %805 = vmatprep.subr.bf16.mxu1 %v1052_v1  ;;  %767 = vmatprep.mubr.msk.f32.mxu1 %vm1051_vm0, %v1050_v0  ;;  %v392_v4 = vld [vmem:[#allocation2] sm:$0xff]  ;;  %v395_v7 = vld [vmem:[#allocation2 + $0x18] sm:$0xff]  ;;  %v397_v11 = vld [vmem:[#allocation2 + $0x28] sm:$0xff] }
  0x53   : > { %731 = vmatpush3.msk.msra.mxu0 %vm317_vm1, %v305_v2  ;;  %v806_v8 = vpack.c.bf16 %v393_v5, %v392_v4  ;;  %v809_v9 = vpack.c.bf16 %v395_v7, %v394_v6  ;;  %v396_v10 = vld [vmem:[#allocation2 + $0x20] sm:$0xff]  ;;  %v398_v13 = vld [vmem:[#allocation2 + $0x30] sm:$0xff]  ;;  %v399_v14 = vld [vmem:[#allocation2 + $0x38] sm:$0xff]  ;;  %s297_s9 = sand.u32 1, %s1036_s25   ;;  %p1318_p1 = scmp.ne.s32.totalorder %s1309_s11, 0 }
  0x54   : > { %s684_s16 = sshll.u32 %s301_s13, 3  ;;  %829 = vmatprep.subr.bf16.mxu0 %v1052_v1  ;;  %v812_v12 = vpack.c.bf16 %v397_v11, %v396_v10  ;;  %v815_v15 = vpack.c.bf16 %v399_v14, %v398_v13  ;;  %v400_v16 = vld [vmem:[#allocation2 + $0x40] sm:$0xff]  ;;  %v401_v17 = vld [vmem:[#allocation2 + $0x48] sm:$0xff]  ;;  %v402_v19 = vld [vmem:[#allocation2 + $0x50] sm:$0xff]  ;;  %s683_s15 = sshll.u32 %s297_s9, 3 }
  0x55   : > { %s303_s17 = scalar_lea.vmem %s1297_s0, %s684_s16  ;;  %807 = vmatpush3.bf16.msra.mxu1 %v806_v8  ;;  %v818_v18 = vpack.c.bf16 %v401_v17, %v400_v16  ;;  %v403_v20 = vld [vmem:[#allocation2 + $0x58] sm:$0xff]  ;;  %v404_v22 = vld [vmem:[#allocation2 + $0x60] sm:$0xff]  ;;  %v405_v23 = vld [vmem:[#allocation2 + $0x68] sm:$0xff]  ;;  %s691_s13 = sshll.u32 %s1115_s28, 7 }
  0x56   : > { %v304_v3 = vld [vmem:[%s303_s17] sm:$0xff]  ;;  %808 = vmatprep.subr.bf16.mxu1 %v1052_v1  ;;  %v821_v21 = vpack.c.bf16 %v403_v20, %v402_v19  ;;  %v824_v24 = vpack.c.bf16 %v405_v23, %v404_v22  ;;  %v406_v25 = vld [vmem:[#allocation2 + $0x70] sm:$0xff]  ;;  %v407_v26 = vld [vmem:[#allocation2 + $0x78] sm:$0xff]  ;;  %s299_s16 = scalar_lea.vmem [#allocation7], %s683_s15  ;;  %s1255_s20 = scalar_lea.hbm %s1304_s7, %s691_s13 }
  0x57   : > { %733 = vmatmul.mubr.msk.f32.vlgmr.msra.gmra.mrb[0].mxu0 %vm313_vm2, %v304_v3  ;;  %v827_v27 = vpack.c.bf16 %v407_v26, %v406_v25  ;;  %v486_v28 = vld [vmem:[#allocation5] sm:$0xff]  ;;  %v487_v29 = vld [vmem:[#allocation5 + $0x8] sm:$0xff]  ;;  %v488_v30 = vld [vmem:[#allocation5 + $0x10] sm:$0xff]  ;;  %s594_s18 = sshll.u32 %s299_s16, 4  ;;  %s581_s21 = scalar_lea.sflag [#allocation4], %s297_s9  ;;  %s1257_s18 = int_to_ptr.vmem [resolvable:$true] %s594_s18 }
  0x58   : > { %802 = vmatprep.mubr.msk.f32.mxu0 %vm1051_vm0, %v1050_v0  ;;  %v830_v31 = vpack.c.bf16 %v487_v29, %v486_v28  ;;  %v489_v32 = vld [vmem:[#allocation5 + $0x18] sm:$0xff]  ;;  %v490_v34 = vld [vmem:[#allocation5 + $0x20] sm:$0xff]  ;;  %v491_v35 = vld [vmem:[#allocation5 + $0x28] sm:$0xff]  ;;  %s974_s22 = scalar_lea.vmem %s1257_s18, 128  ;;  %s1053_s28 = smov [#allocation7]  }
  0x59   : > { %810 = vmatpush3.bf16.msra.mxu1 %v809_v9  ;;  %v833_v33 = vpack.c.bf16 %v489_v32, %v488_v30  ;;  %v836_v36 = vpack.c.bf16 %v491_v35, %v490_v34  ;;  %v492_v37 = vld [vmem:[#allocation5 + $0x30] sm:$0xff]  ;;  %v493_v38 = vld [vmem:[#allocation5 + $0x38] sm:$0xff]  ;;  %v494_v40 = vld [vmem:[#allocation5 + $0x40] sm:$0xff]  ;;  %p975_p12 = scmp.ne.s32.totalorder %s1257_s18, %s974_s22  ;;  %s978_s23 = sshll.u32 %s1053_s28, 4  ;;  %s979_s23 = int_to_ptr.vmem [resolvable:$false] %s978_s23 }
  0x5a   : > { %811 = vmatprep.subr.bf16.mxu1 %v1052_v1  ;;  %831 = vmatpush3.bf16.msra.mxu0 %v830_v31  ;;  %v839_v39 = vpack.c.bf16 %v493_v38, %v492_v37  ;;  %v495_v41 = vld [vmem:[#allocation5 + $0x48] sm:$0xff]  ;;  %v496_v43 = vld [vmem:[#allocation5 + $0x50] sm:$0xff]  ;;  %v497_v44 = vld [vmem:[#allocation5 + $0x58] sm:$0xff]  ;;  %s980_s29 = scalar_lea.vmem %s979_s23, 256  ;;  %p981_p4 = scmp.lt.s32.totalorder %s1257_s18, %s979_s23 }
  0x5b   : > { %832 = vmatprep.subr.bf16.mxu0 %v1052_v1  ;;  %v842_v42 = vpack.c.bf16 %v495_v41, %v494_v40  ;;  %v845_v45 = vpack.c.bf16 %v497_v44, %v496_v43  ;;  %v498_v46 = vld [vmem:[#allocation5 + $0x60] sm:$0xff]  ;;  %v499_v47 = vld [vmem:[#allocation5 + $0x68] sm:$0xff]  ;;  %v500_v54 = vld [vmem:[#allocation5 + $0x70] sm:$0xff]  ;;  %p976_p2 = pnand %p975_p12, %p1318_p1  ;;  %p982_p7 = scmp.lt.s32.totalorder %s980_s29, %s974_s22 }
  0x5c   : > { %v848_v48 = vpack.c.bf16 %v499_v47, %v498_v46  ;;  %v685_v49 = vld [vmem:[%s1299_s2] ss:$0 sm:$0xff]  ;;  %v501_v55 = vld [vmem:[#allocation5 + $0x78] sm:$0xff] }
  0x5d   : > { %813 = vmatpush3.bf16.msra.mxu1 %v812_v12  ;;  %v851_v56 = vpack.c.bf16 %v501_v55, %v500_v54  ;;  %v688_v57 = vld [vmem:[%s1301_s4] ss:$0 sm:$0xff]  ;;  %p977_p3 = pneg %p976_p2  ;;  %p983_p8 = por %p982_p7, %p981_p4 }
  0x5e   : > { %814 = vmatprep.subr.bf16.mxu1 %v1052_v1  ;;  %834 = vmatpush3.bf16.msra.mxu0 %v833_v33  ;;  %v689_v62 = vld [vmem:[%s1303_s6] ss:$0 sm:$0xff] }
  0x5f   : > { %835 = vmatprep.subr.bf16.mxu0 %v1052_v1  ;;  %p984_p11 = pnand %p983_p8, %p977_p3 }
  0x61   : > { %816 = vmatpush3.bf16.msra.mxu1 %v815_v15 }
  0x62   : > { %817 = vmatprep.subr.bf16.mxu1 %v1052_v1  ;;  %837 = vmatpush3.bf16.msra.mxu0 %v836_v36 }
  0x63   : > { %838 = vmatprep.subr.bf16.mxu0 %v1052_v1 }
  0x65   : > { %819 = vmatpush3.bf16.msra.mxu1 %v818_v18 }
  0x66   : > { %820 = vmatprep.subr.bf16.mxu1 %v1052_v1  ;;  %840 = vmatpush3.bf16.msra.mxu0 %v839_v39 }
  0x67   : > { %841 = vmatprep.subr.bf16.mxu0 %v1052_v1 }
  0x69   : > { %822 = vmatpush3.bf16.msra.mxu1 %v821_v21 }
  0x6a   : > { %823 = vmatprep.subr.bf16.mxu1 %v1052_v1  ;;  %843 = vmatpush3.bf16.msra.mxu0 %v842_v42 }
  0x6b   : > { %844 = vmatprep.subr.bf16.mxu0 %v1052_v1 }
  0x6d   : > { %825 = vmatpush3.bf16.msra.mxu1 %v824_v24 }
  0x6e   : > { %826 = vmatprep.subr.bf16.mxu1 %v1052_v1  ;;  %846 = vmatpush3.bf16.msra.mxu0 %v845_v45 }
  0x6f   : > { %847 = vmatprep.subr.bf16.mxu0 %v1052_v1 }
  0x71   : > { %828 = vmatpush3.bf16.msra.mxu1 %v827_v27 }
  0x72   : > { %849 = vmatpush3.bf16.msra.mxu0 %v848_v48 }
  0x73   : > { %850 = vmatprep.subr.bf16.mxu0 %v1052_v1 }
  0x76   : > { %852 = vmatpush3.bf16.msra.mxu0 %v851_v56 }
 0x12a   : > { %v387_v50 = vpop.f32.mrb[0].mxu0 }
 0x12b   : > { %v388_v51 = vadd.f32 %v685_v49, %v387_v50  ;;  %v734_v52 = vpop.f32.mrb[1].mxu0 }
 0x12d   : > { %v391_v53 = vmax.f32 %v388_v51, 0.0 }
 0x12f   : > { %768 = vmatmul.mubr.f32.vlgmr.msra.gmra.mrb[0].mxu1 %v391_v53 }
 0x202   : > { %v481_v58 = vpop.f32.mrb[0].mxu1 }
 0x203   : > { %v482_v59 = vadd.f32 %v688_v57, %v481_v58  ;;  %v769_v60 = vpop.f32.mrb[1].mxu1 }
 0x205   : > { %v485_v61 = vmax.f32 %v482_v59, 0.0 }
 0x207   : > { %803 = vmatmul.mubr.f32.vlgmr.msra.gmra.mrb[2].mxu0 %v485_v61 }
 0x2da   : > { %v575_v63 = vpop.f32.mrb[2].mxu0 }
 0x2db   : > { %v576_v0 = vadd.f32 %v689_v62, %v575_v63  ;;  %v804_v1 = vpop.f32.mrb[3].mxu0 }
 0x2dd   : > { %579 = vst [vmem:[%s299_s16] sm:$0xff] %v576_v0 }
 0x2de   : > { %987 = shalt.err (!%p984_p11)
}
 0x2df   : > { %s988_s8 = scalar_lea.hbm %s1255_s20, 128  ;;  %s992_s10 = scalar_lea.hbm %s1304_s7, 256 }
 0x2e0   : > { %p989_p13 = scmp.ne.s32.totalorder %s1255_s20, %s988_s8  ;;  %p993_p6 = scmp.lt.u32.totalorder %s1255_s20, %s1304_s7 }
 0x2e1   : > { %p994_p9 = scmp.lt.u32.totalorder %s992_s10, %s988_s8  ;;  %p996_p12 = scmp.lt.u32.totalorder %s988_s8, %s1255_s20 }
 0x2e2   : > { %p990_p5 = pnand %p989_p13, %p1318_p1 }
 0x2e3   : > { %p995_p10 = por %p994_p9, %p993_p6 }
 0x2e4   : > { %p991_p0 = pneg %p990_p5 }
 0x2e5   : > { %p997_p2 = por %p996_p12, %p995_p10 }
 0x2e7   : > { %p998_p3 = pnand %p997_p2, %p991_p0 }
 0x2e9   : > { %1001 = shalt.err (!%p998_p3)
}
 0x2ea   : > { %861 = dma.vmem_to_hbm [thread:$0]  (%p1318_p1), %s1257_s18, 128, %s1255_s20, %s581_s21  }
 0x2eb PF: > { %p878_p4 = scmp.ge.s32.totalorder %s1044_s27, 2  ;;  %s606_s16 = sand.u32 1, %s1032_s24  }
 0x2ec   : > { %p1319_p7 = scmp.ne.s32.totalorder %s1310_s12, 0  ;;  %s607_s14 = scalar_lea.sflag [#allocation4], %s606_s16 }
 0x2ee   : > { %p871_p8 = pnand %p878_p4, %p1319_p7 }
 0x2f0   : > { %1027 = dma.done.wait (!%p871_p8), %s607_s14, 128  }
 0x2f1   : > { %1029 = vsyncadd (!%p871_p8), %s607_s14, 4294967168  ;;  %s1320_s17 = sld [smem:[#allocation11_spill]]  ;;  %p19_p11 = scmp.ge.s32.totalorder %s1119_s30, 4  }
 0x2f2   : > { %s1321_s24 = smov %s1036_s25  ;;  %s1322_s25 = smov %s1040_s26 }
 0x2f3   : > { %s1324_s27 = smov %s1119_s30  ;;  %21 = sbr.rel (!%p19_p11) target bundleno = 5 (0x5), region = 92 }
 0x2f7   : > { %s1323_s26 = smov %s1320_s17 }
 0x2fa   :  { %612 = vsyncpa [#allocation3], 1 }
 0x2fb   :  { %614 = vsyncpa [#allocation3 + $0x1], 1 }
 0x2fc   :  { %615 = vsyncpa [#allocation6], 1 }
 0x2fd   :  { %616 = vsyncpa [#allocation4], 1 }
 0x2fe   :  { %618 = vsyncpa [#allocation4 + $0x1], 1 }

</bundles_post_ra>
